<compile_context>
chip_gen: v7x
topology: tpu7x:2x2x1
jax: 0.10.0
libtpu: 0.0.40
codegen_flags: <defaults>
</compile_context>

<pallas_src>
import jax
import jax.numpy as jnp
from jax.experimental import pallas as pl
from jax.experimental.pallas import tpu as pltpu

LANE = 128


def _relu_kernel(x_ref, o_ref):
    # Elementwise ReLU against an immediate zero (no zero-filled vreg /
    # broadcast_in_dim materialized).
    o_ref[...] = jnp.maximum(x_ref[...], 0.0)


def _round_up(n: int, m: int) -> int:
    return ((n + m - 1) // m) * m


def chen_forward(x: jax.Array) -> jax.Array:
    """Pallas equivalent of Chen().forward(x): elementwise ReLU.

    Layout plumbing (flatten / pad / reshape back) happens in the wrapper in
    plain JAX; the Pallas kernel only ever sees a lane-dense 2D slab so its
    loads/stores are full-width and unmasked.
    """
    orig_shape = x.shape
    orig_dtype = x.dtype
    total = x.size

    # Lane-dense slab width: multiple of 128. Small tensors get one padded
    # block; large tensors use a 512-wide tiled grid.
    if total <= 8 * LANE:
        width = _round_up(max(total, 1), LANE)      # <= 1024
    else:
        width = 4 * LANE                            # 512

    padded_total = _round_up(total, width)
    flat = x.reshape(-1)
    if padded_total != total:
        flat = jnp.pad(flat, (0, padded_total - total))
    rows = padded_total // width
    slab = flat.reshape(rows, width)

    tile_rows = 1024  # 1024 x 512 f32 tile = 2 MiB; x4 (in+out, double-buffered) = 8 MiB

    if rows <= tile_rows:
        # Single full-array block, no grid: whole slab DMA'd HBM->VMEM once,
        # ReLU on the VPU, one DMA back. No per-grid-step overhead.
        out_slab = pl.pallas_call(
            _relu_kernel,
            out_shape=jax.ShapeDtypeStruct(slab.shape, orig_dtype),
        )(slab)
    else:
        # Tiled path for real-sized tensors: lane-dense (tile_rows, width)
        # blocks, grid over the leading dim, "parallel" so megacore/v7x's two
        # TensorCores shard this purely HBM-bandwidth-bound loop.
        padded_rows = _round_up(rows, tile_rows)
        if padded_rows != rows:
            slab = jnp.pad(slab, ((0, padded_rows - rows), (0, 0)))
        out_slab = pl.pallas_call(
            _relu_kernel,
            out_shape=jax.ShapeDtypeStruct(slab.shape, orig_dtype),
            grid=(padded_rows // tile_rows,),
            in_specs=[pl.BlockSpec((tile_rows, width), lambda i: (i, 0))],
            out_specs=pl.BlockSpec((tile_rows, width), lambda i: (i, 0)),
            compiler_params=pltpu.CompilerParams(
                dimension_semantics=("parallel",),
            ),
        )(slab)
        out_slab = out_slab[:rows]

    return out_slab.reshape(-1)[:total].reshape(orig_shape)


if __name__ == "__main__":
    # Deterministic example input. The reference script does
    #   input = torch.reshape(input, (-1, 1, 2, 2))
    # so we build a flat tensor of 32 elements and reshape to (8, 1, 2, 2).
    key = jax.random.PRNGKey(0)
    flat = jax.random.normal(key, (32,), dtype=jnp.float32)
    x = jnp.reshape(flat, (-1, 1, 2, 2))  # -> (8, 1, 2, 2), NCHW

    out = chen_forward(x)
    out = jax.block_until_ready(out)

    # Correctness check against plain-JAX reference (same semantics as torch ReLU).
    ref = jnp.maximum(x, 0.0)
    assert out.shape == x.shape and out.dtype == x.dtype
    assert bool(jnp.allclose(out, ref)), "Pallas ReLU mismatch vs reference"

    print("KERNEL_OK")
</pallas_src>

<mosaic_0001>
module attributes {stable_mosaic.version = 11 : i64} {
  func.func @_relu_kernel(%arg0: memref<1x128xf32, #tpu.memory_space<vmem>>, %arg1: memref<1x128xf32, #tpu.memory_space<vmem>>) attributes {dimension_semantics = [], scalar_prefetch = 0 : i64, scratch_operands = 0 : i64, tpu.core_type = #tpu.core_type<tc>} {
    %c0 = arith.constant 0 : index
    %c0_0 = arith.constant 0 : index
    %0 = vector.load %arg0[%c0, %c0_0] : memref<1x128xf32, #tpu.memory_space<vmem>>, vector<1x128xf32>
    %cst = arith.constant 0.000000e+00 : f32
    %1 = vector.broadcast %cst : f32 to vector<1x128xf32>
    %2 = arith.maximumf %0, %1 : vector<1x128xf32>
    %c0_1 = arith.constant 0 : index
    %c0_2 = arith.constant 0 : index
    %3 = vector.load %arg1[%c0_1, %c0_2] : memref<1x128xf32, #tpu.memory_space<vmem>>, vector<1x128xf32>
    tpu.vector_store %arg1[%c0_1, %c0_2], %2 {strides = array<i32>} : memref<1x128xf32, #tpu.memory_space<vmem>>, vector<1x128xf32>,
    return
  }
}

</mosaic_0001>

<bundles_post_ra>
// kernel: tpu_custom_call.1
= control target key start
LH: loop header
LB: loop body
LE: loop exit
PB: predicated region body
PF: predicated region fallthrough
CT: control target
= control target key end

     0   :  { %6 = vsyncpa [#allocation3], 0  ;;  %s125_s0 = inlined_call_operand.hbm [shape: f32[1,128], index: 0, kind: input, shape index: {}]   ;;  %s126_s1 = inlined_call_operand.hbm [shape: f32[1,128], index: 1, kind: output, shape index: {}]  }
   0x1   :  { %7 = vsyncpa [#allocation4], 0  ;;  %s89_s6 = smov [#allocation2]   ;;  %s41_s10 = scalar_lea.hbm %s125_s0, 16 }
   0x2   :  { %s14_s7 = sshll.u32 %s89_s6, 4  ;;  %p42_p0 = scmp.ne.s32.totalorder %s125_s0, %s41_s10  ;;  %s15_s7 = int_to_ptr.vmem [resolvable:$true] %s14_s7 }
   0x3   :  { %p45_p1 = scmp.lt.u32.totalorder %s41_s10, %s125_s0 }
   0x5   :  { %p47_p2 = pnand %p45_p1, %p42_p0 }
   0x7   :  { %50 = shalt.err (!%p47_p2)
}
   0x8   :  { %s51_s15 = scalar_lea.vmem %s15_s7, 16  ;;  %s55_s16 = scalar_lea.vmem %s15_s7, 32 }
   0x9   :  { %p52_p3 = scmp.ne.s32.totalorder %s15_s7, %s51_s15  ;;  %p56_p4 = scmp.lt.s32.totalorder %s15_s7, %s15_s7 }
   0xa   :  { %p57_p5 = scmp.lt.s32.totalorder %s55_s16, %s51_s15 }
   0xc   :  { %p58_p6 = por %p57_p5, %p56_p4 }
   0xe   :  { %p59_p7 = pnand %p58_p6, %p52_p3 }
  0x10   :  { %62 = shalt.err (!%p59_p7)
}
  0x11   :  { %17 = dma.hbm_to_vmem [thread:$0]  %s125_s0, 16, %s15_s7, [#allocation3]  }
  0x12   :  { %85 = dma.done.wait [#allocation3], 16  }
  0x13   :  { %86 = vsyncadd [#allocation3], 4294967280  ;;  %s90_s19 = smov [#allocation5]   ;;  %v21_v0 = vld [vmem:[#allocation2] sm:$0x1] }
  0x14   :  { %s30_s20 = sshll.u32 %s90_s19, 4  ;;  %v22_v1 = vmax.f32 %v21_v0, 0.0  ;;  %s31_s20 = int_to_ptr.vmem [resolvable:$true] %s30_s20 }
  0x15   :  { %s63_s21 = scalar_lea.vmem %s31_s20, 16  ;;  %s67_s22 = scalar_lea.vmem %s31_s20, 32 }
  0x16   :  { %23 = vst [vmem:[#allocation5] sm:$0x1] %v22_v1  ;;  %p64_p8 = scmp.ne.s32.totalorder %s31_s20, %s63_s21  ;;  %p68_p9 = scmp.lt.s32.totalorder %s31_s20, %s31_s20 }
  0x17   :  { %p69_p10 = scmp.lt.s32.totalorder %s67_s22, %s63_s21 }
  0x19   :  { %p70_p11 = por %p69_p10, %p68_p9 }
  0x1b   :  { %p71_p12 = pnand %p70_p11, %p64_p8 }
  0x1d   :  { %74 = shalt.err (!%p71_p12)
}
  0x1e   :  { %s75_s0 = scalar_lea.hbm %s126_s1, 16 }
  0x1f   :  { %p76_p13 = scmp.ne.s32.totalorder %s126_s1, %s75_s0  ;;  %p79_p0 = scmp.lt.u32.totalorder %s75_s0, %s126_s1 }
  0x21   :  { %p81_p1 = pnand %p79_p0, %p76_p13 }
  0x23   :  { %84 = shalt.err (!%p81_p1)
}
  0x24   :  { %33 = dma.vmem_to_hbm [thread:$0]  %s31_s20, 16, %s126_s1, [#allocation4]  }
  0x25   :  { %87 = dma.done.wait [#allocation4], 16  }
  0x26   :  { %88 = vsyncadd [#allocation4], 4294967280 }
  0x27   :  { %37 = vsyncpa [#allocation3], 1 }
  0x28   :  { %38 = vsyncpa [#allocation4], 1 }

</bundles_post_ra>
